<compile_context>
chip_gen: v7x
topology: tpu7x:2x2x1
jax: 0.10.0
libtpu: 0.0.40
codegen_flags: <defaults>
</compile_context>

<pallas_src>
import jax
import jax.numpy as jnp
from jax.experimental import pallas as pl
from jax.experimental.pallas import tpu as pltpu

LANE = 128  # lane width of a vreg


def _round_up(n: int, m: int) -> int:
    return (n + m - 1) // m * m


def _pad2(a, rows, cols):
    r, c = a.shape
    return jnp.pad(a, ((0, rows - r), (0, cols - c)))


def _mlp_kernel(x_ref, w1_ref, b1_ref, w2_ref, b2_ref, w3_ref, b3_ref, o_ref):
    # x tile: (TILE_B, IN_P) f32; weights (K_P, N_P) bf16; biases (1, N_P) f32.
    h = x_ref[...]  # already f32 (wrapper mirrors torch `x = x.float()`)

    h = jnp.maximum(
        jnp.dot(h.astype(jnp.bfloat16), w1_ref[...],
                preferred_element_type=jnp.float32) + b1_ref[...], 0.0)
    h = jnp.maximum(
        jnp.dot(h.astype(jnp.bfloat16), w2_ref[...],
                preferred_element_type=jnp.float32) + b2_ref[...], 0.0)
    h = jnp.maximum(
        jnp.dot(h.astype(jnp.bfloat16), w3_ref[...],
                preferred_element_type=jnp.float32) + b3_ref[...], 0.0)

    # torch `.type(torch.LongTensor)` truncates toward zero; post-ReLU values
    # are >= 0 so int truncation matches exactly.
    # TODO(synk): torch LongTensor is int64; kernel emits int32 (identical for
    # this value range, wraps only for activations >= 2**31).
    o_ref[...] = h.astype(jnp.int32)


def influencer_brand_encoder(x, params, *, tile_b=512):
    """Fused forward of InfluencerBrandEncoder. x: (batch, in_features)."""
    w1, b1, w2, b2, w3, b3 = params
    batch, in_size = x.shape
    hid = w1.shape[1]
    out_size = w3.shape[1]

    # Lane-pad every feature dim to a multiple of 128.
    in_p = _round_up(in_size, LANE)
    hid_p = _round_up(hid, LANE)
    out_p = _round_up(out_size, LANE)

    # Row-pad batch to a multiple of the batch tile (>= 8 sublanes). tile_b of
    # 512 keeps per-step VMEM tiny (< 2 MiB double-buffered) — safe even under
    # the v7x 64 MiB / 32 MiB-scoped budget.
    tile_b = max(8, min(tile_b, _round_up(batch, 8)))
    batch_p = _round_up(batch, tile_b)

    x_p = _pad2(x.astype(jnp.float32), batch_p, in_p)       # torch `x.float()`
    w1_p = _pad2(w1, in_p, hid_p).astype(jnp.bfloat16)
    w2_p = _pad2(w2, hid_p, hid_p).astype(jnp.bfloat16)
    w3_p = _pad2(w3, hid_p, out_p).astype(jnp.bfloat16)
    b1_p = _pad2(b1.reshape(1, -1).astype(jnp.float32), 1, hid_p)
    b2_p = _pad2(b2.reshape(1, -1).astype(jnp.float32), 1, hid_p)
    b3_p = _pad2(b3.reshape(1, -1).astype(jnp.float32), 1, out_p)

    grid = (batch_p // tile_b,)
    resident = lambda i: (0, 0)  # weights/biases stay in VMEM across the grid

    flops = 2 * batch_p * (in_p * hid_p + hid_p * hid_p + hid_p * out_p)
    bytes_accessed = (x_p.size * 4
                      + (w1_p.size + w2_p.size + w3_p.size) * 2
                      + (b1_p.size + b2_p.size + b3_p.size) * 4
                      + batch_p * out_p * 4)

    out = pl.pallas_call(
        _mlp_kernel,
        out_shape=jax.ShapeDtypeStruct((batch_p, out_p), jnp.int32),
        grid_spec=pltpu.PrefetchScalarGridSpec(
            num_scalar_prefetch=0,
            grid=grid,
            in_specs=[
                pl.BlockSpec((tile_b, in_p), lambda i: (i, 0)),
                pl.BlockSpec((in_p, hid_p), resident),
                pl.BlockSpec((1, hid_p), resident),
                pl.BlockSpec((hid_p, hid_p), resident),
                pl.BlockSpec((1, hid_p), resident),
                pl.BlockSpec((hid_p, out_p), resident),
                pl.BlockSpec((1, out_p), resident),
            ],
            out_specs=pl.BlockSpec((tile_b, out_p), lambda i: (i, 0)),
        ),
        compiler_params=pltpu.CompilerParams(
            dimension_semantics=("parallel",),  # shard batch tiles over v7x's 2 TCs
        ),
        cost_estimate=pl.CostEstimate(
            flops=flops, transcendentals=0, bytes_accessed=bytes_accessed),
    )(x_p, w1_p, b1_p, w2_p, b2_p, w3_p, b3_p)

    # Slice the lane/row padding back off.
    return out[:batch, :out_size]


def init_params(key, input_size, hidden_size, output_size):
    """Deterministic init mimicking nn.Linear default (uniform +/- 1/sqrt(fan_in))."""
    ks = jax.random.split(key, 6)

    def lin(kw, kb, fan_in, fan_out):
        bound = 1.0 / jnp.sqrt(fan_in)
        w = jax.random.uniform(kw, (fan_in, fan_out), jnp.float32, -bound, bound)
        b = jax.random.uniform(kb, (1, fan_out), jnp.float32, -bound, bound)
        return w, b

    w1, b1 = lin(ks[0], ks[1], input_size, hidden_size)
    w2, b2 = lin(ks[2], ks[3], hidden_size, hidden_size)
    w3, b3 = lin(ks[4], ks[5], hidden_size, output_size)
    return (w1, b1, w2, b2, w3, b3)


if __name__ == "__main__":
    key = jax.random.PRNGKey(0)
    k_x, k_p = jax.random.split(key)

    batch, input_size, hidden_size, output_size = 8, 32, 64, 16

    # Scale inputs up so the post-ReLU outputs aren't all zero after int cast.
    x = jax.random.normal(k_x, (batch, input_size), jnp.float32) * 4.0
    params = init_params(k_p, input_size, hidden_size, output_size)

    out = influencer_brand_encoder(x, params)
    out = jax.block_until_ready(out)

    # Pure-JAX reference with full-f32 (PyTorch-exact) math.
    w1, b1, w2, b2, w3, b3 = params
    h = jnp.maximum(x @ w1 + b1, 0.0)
    h = jnp.maximum(h @ w2 + b2, 0.0)
    ref = jnp.maximum(h @ w3 + b3, 0.0).astype(jnp.int32)

    assert out.shape == (batch, output_size)
    assert out.dtype == jnp.int32
    # Kernel uses bf16 weights/activations on the MXU (f32 accumulation); the
    # truncating int cast can differ by at most 1 from the full-f32 reference
    # when an activation lands within bf16 epsilon of an integer boundary.
    assert int(jnp.max(jnp.abs(out - ref))) <= 1

    print("KERNEL_OK")
</pallas_src>

<mosaic_0001>
module attributes {stable_mosaic.version = 11 : i64} {
  func.func @_mlp_kernel(%arg0: i32, %arg1: memref<8x128xf32, #tpu.memory_space<vmem>>, %arg2: memref<128x128xbf16, #tpu.memory_space<vmem>>, %arg3: memref<1x128xf32, #tpu.memory_space<vmem>>, %arg4: memref<128x128xbf16, #tpu.memory_space<vmem>>, %arg5: memref<1x128xf32, #tpu.memory_space<vmem>>, %arg6: memref<128x128xbf16, #tpu.memory_space<vmem>>, %arg7: memref<1x128xf32, #tpu.memory_space<vmem>>, %arg8: memref<8x128xi32, #tpu.memory_space<vmem>>) attributes {dimension_semantics = [#tpu.dimension_semantics<parallel>], iteration_bounds = array<i64: 1>, scalar_prefetch = 0 : i64, scratch_operands = 0 : i64, tpu.core_type = #tpu.core_type<tc>, window_params = [{transform_indices = @transform_0, window_bounds = array<i64: 8, 128>}, {pipeline_mode = #tpu.pipeline_mode<synchronous>, transform_indices = @transform_1, window_bounds = array<i64: 128, 128>}, {pipeline_mode = #tpu.pipeline_mode<synchronous>, transform_indices = @transform_2, window_bounds = array<i64: 1, 128>}, {pipeline_mode = #tpu.pipeline_mode<synchronous>, transform_indices = @transform_3, window_bounds = array<i64: 128, 128>}, {pipeline_mode = #tpu.pipeline_mode<synchronous>, transform_indices = @transform_4, window_bounds = array<i64: 1, 128>}, {pipeline_mode = #tpu.pipeline_mode<synchronous>, transform_indices = @transform_5, window_bounds = array<i64: 128, 128>}, {pipeline_mode = #tpu.pipeline_mode<synchronous>, transform_indices = @transform_6, window_bounds = array<i64: 1, 128>}, {transform_indices = @transform_7, window_bounds = array<i64: 8, 128>}]} {
    %c0 = arith.constant 0 : index
    %c0_0 = arith.constant 0 : index
    %0 = vector.load %arg1[%c0, %c0_0] : memref<8x128xf32, #tpu.memory_space<vmem>>, vector<8x128xf32>
    %1 = arith.truncf %0 : vector<8x128xf32> to vector<8x128xbf16>
    %c0_1 = arith.constant 0 : index
    %c0_2 = arith.constant 0 : index
    %2 = vector.load %arg2[%c0_1, %c0_2] : memref<128x128xbf16, #tpu.memory_space<vmem>>, vector<128x128xbf16>
    %cst = arith.constant dense<0.000000e+00> : vector<8x128xf32>
    %3 = tpu.matmul %1, %2, %cst {dimension_numbers = #tpu.dot_dimension_numbers<[1], [0], [0], [1], [0, 0, 1, 1], [], []>} : vector<8x128xbf16>, vector<128x128xbf16>, vector<8x128xf32> -> vector<8x128xf32>
    %c0_3 = arith.constant 0 : index
    %c0_4 = arith.constant 0 : index
    %4 = vector.load %arg3[%c0_3, %c0_4] : memref<1x128xf32, #tpu.memory_space<vmem>>, vector<1x128xf32>
    %5 = vector.broadcast %4 : vector<1x128xf32> to vector<8x128xf32>
    %6 = arith.addf %3, %5 : vector<8x128xf32>
    %cst_5 = arith.constant 0.000000e+00 : f32
    %7 = vector.broadcast %cst_5 : f32 to vector<8x128xf32>
    %8 = arith.maximumf %6, %7 : vector<8x128xf32>
    %9 = arith.truncf %8 : vector<8x128xf32> to vector<8x128xbf16>
    %c0_6 = arith.constant 0 : index
    %c0_7 = arith.constant 0 : index
    %10 = vector.load %arg4[%c0_6, %c0_7] : memref<128x128xbf16, #tpu.memory_space<vmem>>, vector<128x128xbf16>
    %cst_8 = arith.constant dense<0.000000e+00> : vector<8x128xf32>
    %11 = tpu.matmul %9, %10, %cst_8 {dimension_numbers = #tpu.dot_dimension_numbers<[1], [0], [0], [1], [0, 0, 1, 1], [], []>} : vector<8x128xbf16>, vector<128x128xbf16>, vector<8x128xf32> -> vector<8x128xf32>
    %c0_9 = arith.constant 0 : index
    %c0_10 = arith.constant 0 : index
    %12 = vector.load %arg5[%c0_9, %c0_10] : memref<1x128xf32, #tpu.memory_space<vmem>>, vector<1x128xf32>
    %13 = vector.broadcast %12 : vector<1x128xf32> to vector<8x128xf32>
    %14 = arith.addf %11, %13 : vector<8x128xf32>
    %cst_11 = arith.constant 0.000000e+00 : f32
    %15 = vector.broadcast %cst_11 : f32 to vector<8x128xf32>
    %16 = arith.maximumf %14, %15 : vector<8x128xf32>
    %17 = arith.truncf %16 : vector<8x128xf32> to vector<8x128xbf16>
    %c0_12 = arith.constant 0 : index
    %c0_13 = arith.constant 0 : index
    %18 = vector.load %arg6[%c0_12, %c0_13] : memref<128x128xbf16, #tpu.memory_space<vmem>>, vector<128x128xbf16>
    %cst_14 = arith.constant dense<0.000000e+00> : vector<8x128xf32>
    %19 = tpu.matmul %17, %18, %cst_14 {dimension_numbers = #tpu.dot_dimension_numbers<[1], [0], [0], [1], [0, 0, 1, 1], [], []>} : vector<8x128xbf16>, vector<128x128xbf16>, vector<8x128xf32> -> vector<8x128xf32>
    %c0_15 = arith.constant 0 : index
    %c0_16 = arith.constant 0 : index
    %20 = vector.load %arg7[%c0_15, %c0_16] : memref<1x128xf32, #tpu.memory_space<vmem>>, vector<1x128xf32>
    %21 = vector.broadcast %20 : vector<1x128xf32> to vector<8x128xf32>
    %22 = arith.addf %19, %21 : vector<8x128xf32>
    %cst_17 = arith.constant 0.000000e+00 : f32
    %23 = vector.broadcast %cst_17 : f32 to vector<8x128xf32>
    %24 = arith.maximumf %22, %23 : vector<8x128xf32>
    %25 = arith.fptosi %24 : vector<8x128xf32> to vector<8x128xi32>
    %c0_18 = arith.constant 0 : index
    %c0_19 = arith.constant 0 : index
    %26 = vector.load %arg8[%c0_18, %c0_19] : memref<8x128xi32, #tpu.memory_space<vmem>>, vector<8x128xi32>
    tpu.vector_store %arg8[%c0_18, %c0_19], %25 {strides = array<i32>} : memref<8x128xi32, #tpu.memory_space<vmem>>, vector<8x128xi32>,
    return
  }
  func.func @transform_0(%arg0: i32) -> (i32, i32) {
    %c0_i32 = arith.constant 0 : i32
    %c0_i32_0 = arith.constant 0 : i32
    return %arg0, %c0_i32 : i32, i32
  }
  func.func @transform_1(%arg0: i32) -> (i32, i32) {
    %c0_i32 = arith.constant 0 : i32
    %c0_i32_0 = arith.constant 0 : i32
    %c0_i32_1 = arith.constant 0 : i32
    return %c0_i32, %c0_i32_0 : i32, i32
  }
  func.func @transform_2(%arg0: i32) -> (i32, i32) {
    %c0_i32 = arith.constant 0 : i32
    %c0_i32_0 = arith.constant 0 : i32
    %c0_i32_1 = arith.constant 0 : i32
    return %c0_i32, %c0_i32_0 : i32, i32
  }
  func.func @transform_3(%arg0: i32) -> (i32, i32) {
    %c0_i32 = arith.constant 0 : i32
    %c0_i32_0 = arith.constant 0 : i32
    %c0_i32_1 = arith.constant 0 : i32
    return %c0_i32, %c0_i32_0 : i32, i32
  }
  func.func @transform_4(%arg0: i32) -> (i32, i32) {
    %c0_i32 = arith.constant 0 : i32
    %c0_i32_0 = arith.constant 0 : i32
    %c0_i32_1 = arith.constant 0 : i32
    return %c0_i32, %c0_i32_0 : i32, i32
  }
  func.func @transform_5(%arg0: i32) -> (i32, i32) {
    %c0_i32 = arith.constant 0 : i32
    %c0_i32_0 = arith.constant 0 : i32
    %c0_i32_1 = arith.constant 0 : i32
    return %c0_i32, %c0_i32_0 : i32, i32
  }
  func.func @transform_6(%arg0: i32) -> (i32, i32) {
    %c0_i32 = arith.constant 0 : i32
    %c0_i32_0 = arith.constant 0 : i32
    %c0_i32_1 = arith.constant 0 : i32
    return %c0_i32, %c0_i32_0 : i32, i32
  }
  func.func @transform_7(%arg0: i32) -> (i32, i32) {
    %c0_i32 = arith.constant 0 : i32
    %c0_i32_0 = arith.constant 0 : i32
    return %arg0, %c0_i32 : i32, i32
  }
}

</mosaic_0001>

<bundles_post_ra>
// kernel: tpu_custom_call.1
= control target key start
LH: loop header
LB: loop body
LE: loop exit
PB: predicated region body
PF: predicated region fallthrough
CT: control target
= control target key end

     0   :  { %12 = vsyncpa [#allocation3], 0  ;;  %s864_s0 = inlined_call_operand.hbm [shape: f32[8,128], index: 0, kind: input, shape index: {}]   ;;  %s865_s1 = inlined_call_operand.hbm [shape: bf16[128,128], index: 1, kind: input, shape index: {}]   ;;  %s866_s2 = inlined_call_operand.vmem [shape: f32[1,128], index: 2, kind: input, shape index: {}]   ;;  %s867_s3 = inlined_call_operand.hbm [shape: bf16[128,128], index: 3, kind: input, shape index: {}]   ;;  %s868_s4 = inlined_call_operand.vmem [shape: f32[1,128], index: 4, kind: input, shape index: {}]   ;;  %s869_s5 = inlined_call_operand.hbm [shape: bf16[128,128], index: 5, kind: input, shape index: {}]   ;;  %s870_s6 = inlined_call_operand.vmem [shape: f32[1,128], index: 6, kind: input, shape index: {}]   ;;  %s871_s7 = inlined_call_operand.hbm [shape: s32[8,128], index: 7, kind: output, shape index: {}]  }
   0x1   :  { %13 = vsyncpa [#allocation6], 0 }
   0x2   :  { %14 = vsyncpa [#allocation9], 0 }
   0x3   :  { %15 = vsyncpa [#allocation4], 0  ;;  %s707_s24 = smov [#allocation5]   ;;  %s589_s28 = scalar_lea.hbm %s865_s1, 1024 }
   0x4   :  { %s31_s25 = sshll.u32 %s707_s24, 4  ;;  %p590_p0 = scmp.ne.s32.totalorder %s865_s1, %s589_s28  ;;  %s32_s25 = int_to_ptr.vmem [resolvable:$true] %s31_s25 }
   0x5   :  { %p593_p1 = scmp.lt.u32.totalorder %s589_s28, %s865_s1 }
   0x7   :  { %p595_p2 = pnand %p593_p1, %p590_p0 }
   0x9   :  { %598 = shalt.err (!%p595_p2)
}
   0xa   :  { %s599_s10 = scalar_lea.vmem %s32_s25, 1024  ;;  %p604_p4 = scmp.lt.s32.totalorder %s32_s25, %s32_s25 }
   0xb   :  { %p600_p3 = scmp.ne.s32.totalorder %s32_s25, %s599_s10  ;;  %p605_p5 = scmp.lt.s32.totalorder %s599_s10, %s599_s10 }
   0xd   :  { %p606_p6 = por %p605_p5, %p604_p4 }
   0xf   :  { %p607_p7 = pnand %p606_p6, %p600_p3 }
  0x11   :  { %610 = shalt.err (!%p607_p7)
}
  0x12   :  { %s708_s11 = smov 64   ;;  %s709_s12 = smov 4  }
  0x13   :  { %37 = dma.hbm_to_vmem [thread:$0]  %s865_s1, 1024, %s32_s25, [#allocation6], %s708_s11, %s708_s11, %s709_s12  }
  0x14   :  { %s710_s15 = smov [#allocation2]   ;;  %s711_s17 = smov [#allocation7]  }
  0x15   :  { %s22_s16 = sshll.u32 %s710_s15, 4  ;;  %s45_s18 = sshll.u32 %s711_s17, 4  ;;  %s23_s16 = int_to_ptr.vmem [resolvable:$true] %s22_s16  ;;  %s46_s18 = int_to_ptr.vmem [resolvable:$true] %s45_s18 }
  0x16   :  { %s611_s21 = scalar_lea.hbm %s864_s0, 128 }
  0x17   :  { %p612_p8 = scmp.ne.s32.totalorder %s864_s0, %s611_s21  ;;  %p615_p9 = scmp.lt.u32.totalorder %s611_s21, %s864_s0 }
  0x19   :  { %p617_p10 = pnand %p615_p9, %p612_p8 }
  0x1b   :  { %620 = shalt.err (!%p617_p10)
}
  0x1c   :  { %s621_s1 = scalar_lea.vmem %s23_s16, 128  ;;  %p626_p12 = scmp.lt.s32.totalorder %s23_s16, %s23_s16 }
  0x1d   :  { %p622_p11 = scmp.ne.s32.totalorder %s23_s16, %s621_s1  ;;  %p627_p13 = scmp.lt.s32.totalorder %s621_s1, %s621_s1 }
  0x1f   :  { %p628_p0 = por %p627_p13, %p626_p12 }
  0x21   :  { %p629_p1 = pnand %p628_p0, %p622_p11 }
  0x23   :  { %632 = shalt.err (!%p629_p1)
}
  0x24   :  { %25 = dma.hbm_to_vmem [thread:$0]  %s864_s0, 128, %s23_s16, [#allocation3]  }
  0x25   :  { %s633_s30 = scalar_lea.hbm %s867_s3, 1024 }
  0x26   :  { %p634_p2 = scmp.ne.s32.totalorder %s867_s3, %s633_s30  ;;  %p637_p3 = scmp.lt.u32.totalorder %s633_s30, %s867_s3 }
  0x28   :  { %p639_p4 = pnand %p637_p3, %p634_p2 }
  0x2a   :  { %642 = shalt.err (!%p639_p4)
}
  0x2b   :  { %s643_s14 = scalar_lea.vmem %s46_s18, 1024  ;;  %p648_p6 = scmp.lt.s32.totalorder %s46_s18, %s46_s18 }
  0x2c   :  { %p644_p5 = scmp.ne.s32.totalorder %s46_s18, %s643_s14  ;;  %p649_p7 = scmp.lt.s32.totalorder %s643_s14, %s643_s14 }
  0x2e   :  { %p650_p8 = por %p649_p7, %p648_p6 }
  0x30   :  { %p651_p9 = pnand %p650_p8, %p644_p5 }
  0x32   :  { %654 = shalt.err (!%p651_p9)
}
  0x33   :  { %51 = dma.hbm_to_vmem [thread:$0]  %s867_s3, 1024, %s46_s18, [#allocation6], %s708_s11, %s708_s11, %s709_s12  }
  0x34   :  { %s712_s16 = smov [#allocation8]   ;;  %s655_s21 = scalar_lea.hbm %s869_s5, 1024 }
  0x35   :  { %s59_s17 = sshll.u32 %s712_s16, 4  ;;  %p656_p10 = scmp.ne.s32.totalorder %s869_s5, %s655_s21  ;;  %s60_s17 = int_to_ptr.vmem [resolvable:$true] %s59_s17 }
  0x36   :  { %p659_p11 = scmp.lt.u32.totalorder %s655_s21, %s869_s5 }
  0x38   :  { %p661_p12 = pnand %p659_p11, %p656_p10 }
  0x3a   :  { %664 = shalt.err (!%p661_p12)
}
  0x3b   :  { %s665_s1 = scalar_lea.vmem %s60_s17, 1024  ;;  %p670_p0 = scmp.lt.s32.totalorder %s60_s17, %s60_s17 }
  0x3c   :  { %p666_p13 = scmp.ne.s32.totalorder %s60_s17, %s665_s1  ;;  %p671_p1 = scmp.lt.s32.totalorder %s665_s1, %s665_s1 }
  0x3e   :  { %p672_p2 = por %p671_p1, %p670_p0 }
  0x40   :  { %p673_p3 = pnand %p672_p2, %p666_p13 }
  0x42   :  { %676 = shalt.err (!%p673_p3)
}
  0x43   :  { %65 = dma.hbm_to_vmem [thread:$0]  %s869_s5, 1024, %s60_s17, [#allocation9], %s708_s11, %s708_s11, %s709_s12  }
  0x44   :  { %699 = dma.done.wait [#allocation3], 128  }
  0x45   :  { %700 = vsyncadd [#allocation3], 4294967168 }
  0x46   :  { %701 = dma.done.wait [#allocation6], 2048  }
  0x47   :  { %702 = vsyncadd [#allocation6], 4294965248 }
  0x48   :  { %703 = dma.done.wait [#allocation9], 1024  }
  0x49   :  { %704 = vsyncadd [#allocation9], 4294966272  ;;  %v713_v0 = vmov 0.0   ;;  %vm714_vm0 = vmmov 0   ;;  %v565_v1 = vld [vmem:[#allocation5] sm:$0xff]   ;;  %v566_v2 = vld [vmem:[#allocation5 + $0x8] sm:$0xff]  }
  0x4a   :  { %494 = vmatprep.subr.bf16.mxu0 %v713_v0  ;;  %510 = vmatprep.mubr.msk.bf16.mxu0 %vm714_vm0, %v713_v0  ;;  %v567_v3 = vld [vmem:[#allocation5 + $0x10] sm:$0xff]   ;;  %v573_v4 = vld [vmem:[#allocation7] sm:$0xff]   ;;  %v568_v5 = vld [vmem:[#allocation5 + $0x18] sm:$0xff]   ;;  %s715_s28 = smov [#allocation10]  }
  0x4b   :  { %514 = vmatprep.subr.bf16.mxu1 %v713_v0  ;;  %530 = vmatprep.mubr.msk.bf16.mxu1 %vm714_vm0, %v713_v0  ;;  %v574_v6 = vld [vmem:[#allocation7 + $0x8] sm:$0xff]   ;;  %v569_v7 = vld [vmem:[#allocation5 + $0x20] sm:$0xff]   ;;  %v575_v8 = vld [vmem:[#allocation7 + $0x10] sm:$0xff]  }
  0x4c   :  { %495 = vmatpush3.bf16.msra.mxu0 %v565_v1  ;;  %515 = vmatpush3.bf16.msra.mxu1 %v573_v4  ;;  %v570_v9 = vld [vmem:[#allocation5 + $0x28] sm:$0xff]   ;;  %v576_v10 = vld [vmem:[#allocation7 + $0x18] sm:$0xff]   ;;  %v571_v11 = vld [vmem:[#allocation5 + $0x30] sm:$0xff]  }
  0x4d   :  { %496 = vmatprep.subr.bf16.mxu0 %v713_v0  ;;  %516 = vmatprep.subr.bf16.mxu1 %v713_v0  ;;  %v577_v12 = vld [vmem:[#allocation7 + $0x20] sm:$0xff]   ;;  %v572_v13 = vld [vmem:[#allocation5 + $0x38] sm:$0xff]   ;;  %v578_v15 = vld [vmem:[#allocation7 + $0x28] sm:$0xff]  }
  0x4e   :  { %v81_v14 = vld [vmem:[#allocation2] sm:$0xff]  ;;  %v579_v17 = vld [vmem:[#allocation7 + $0x30] sm:$0xff]   ;;  %v581_v19 = vld [vmem:[#allocation8] sm:$0xff]  }
  0x4f   :  { %v82_v16 = vpack.c.bf16 %v81_v14, %v81_v14  ;;  %v580_v18 = vld [vmem:[#allocation7 + $0x38] sm:$0xff]   ;;  %v582_v20 = vld [vmem:[#allocation8 + $0x8] sm:$0xff]   ;;  %v583_v21 = vld [vmem:[#allocation8 + $0x10] sm:$0xff]  }
  0x50   :  { %497 = vmatpush3.bf16.msra.mxu0 %v566_v2  ;;  %517 = vmatpush3.bf16.msra.mxu1 %v574_v6  ;;  %v584_v22 = vld [vmem:[#allocation8 + $0x18] sm:$0xff]   ;;  %v585_v23 = vld [vmem:[#allocation8 + $0x20] sm:$0xff]   ;;  %v586_v24 = vld [vmem:[#allocation8 + $0x28] sm:$0xff]  }
  0x51   :  { %498 = vmatprep.subr.bf16.mxu0 %v713_v0  ;;  %518 = vmatprep.subr.bf16.mxu1 %v713_v0  ;;  %v440_v25 = vld [vmem:[%s866_s2] ss:$0 sm:$0xff]  ;;  %v587_v33 = vld [vmem:[#allocation8 + $0x30] sm:$0xff]  }
  0x52   :  { %v588_v34 = vld [vmem:[#allocation8 + $0x38] sm:$0xff]  }
  0x53   :  { %v449_v35 = vld [vmem:[%s868_s4] ss:$0 sm:$0xff]  ;;  %s429_s4 = sshll.u32 %s715_s28, 4  ;;  %s430_s4 = int_to_ptr.vmem [resolvable:$true] %s429_s4 }
  0x54   :  { %499 = vmatpush3.bf16.msra.mxu0 %v567_v3  ;;  %519 = vmatpush3.bf16.msra.mxu1 %v575_v8  ;;  %v458_v43 = vld [vmem:[%s870_s6] ss:$0 sm:$0xff]  ;;  %s677_s29 = scalar_lea.vmem %s430_s4, 128  ;;  %p682_p5 = scmp.lt.s32.totalorder %s430_s4, %s430_s4 }
  0x55   :  { %500 = vmatprep.subr.bf16.mxu0 %v713_v0  ;;  %520 = vmatprep.subr.bf16.mxu1 %v713_v0  ;;  %p678_p4 = scmp.ne.s32.totalorder %s430_s4, %s677_s29  ;;  %p683_p6 = scmp.lt.s32.totalorder %s677_s29, %s677_s29 }
  0x57   :  { %p684_p7 = por %p683_p6, %p682_p5 }
  0x58   :  { %501 = vmatpush3.bf16.msra.mxu0 %v568_v5  ;;  %521 = vmatpush3.bf16.msra.mxu1 %v576_v10 }
  0x59   :  { %502 = vmatprep.subr.bf16.mxu0 %v713_v0  ;;  %522 = vmatprep.subr.bf16.mxu1 %v713_v0  ;;  %p685_p8 = pnand %p684_p7, %p678_p4 }
  0x5c   :  { %503 = vmatpush3.bf16.msra.mxu0 %v569_v7  ;;  %523 = vmatpush3.bf16.msra.mxu1 %v577_v12 }
  0x5d   :  { %504 = vmatprep.subr.bf16.mxu0 %v713_v0  ;;  %524 = vmatprep.subr.bf16.mxu1 %v713_v0 }
  0x60   :  { %505 = vmatpush3.bf16.msra.mxu0 %v570_v9  ;;  %525 = vmatpush3.bf16.msra.mxu1 %v578_v15 }
  0x61   :  { %506 = vmatprep.subr.bf16.mxu0 %v713_v0  ;;  %526 = vmatprep.subr.bf16.mxu1 %v713_v0 }
  0x64   :  { %507 = vmatpush3.bf16.msra.mxu0 %v571_v11  ;;  %527 = vmatpush3.bf16.msra.mxu1 %v579_v17 }
  0x65   :  { %508 = vmatprep.subr.bf16.mxu0 %v713_v0  ;;  %528 = vmatprep.subr.bf16.mxu1 %v713_v0 }
  0x68   :  { %509 = vmatpush3.bf16.msra.mxu0 %v572_v13  ;;  %529 = vmatpush3.bf16.msra.mxu1 %v580_v18 }
  0x69   :  { %534 = vmatprep.subr.bf16.mxu0 %v713_v0 }
  0x6b   :  { %511 = vmatmul.mubr.bf16.vlgmr.msra.gmra.mrb[0].mxu0 %v82_v16 }
  0x6c   :  { %550 = vmatprep.mubr.msk.bf16.mxu0 %vm714_vm0, %v713_v0  ;;  %535 = vmatpush3.bf16.msra.mxu0 %v581_v19 }
  0x6d   :  { %536 = vmatprep.subr.bf16.mxu0 %v713_v0 }
  0x70   :  { %537 = vmatpush3.bf16.msra.mxu0 %v582_v20 }
  0x71   :  { %538 = vmatprep.subr.bf16.mxu0 %v713_v0 }
  0x74   :  { %539 = vmatpush3.bf16.msra.mxu0 %v583_v21 }
  0x75   :  { %540 = vmatprep.subr.bf16.mxu0 %v713_v0 }
  0x78   :  { %541 = vmatpush3.bf16.msra.mxu0 %v584_v22 }
  0x79   :  { %542 = vmatprep.subr.bf16.mxu0 %v713_v0 }
  0x7c   :  { %543 = vmatpush3.bf16.msra.mxu0 %v585_v23 }
  0x7d   :  { %544 = vmatprep.subr.bf16.mxu0 %v713_v0 }
  0x80   :  { %545 = vmatpush3.bf16.msra.mxu0 %v586_v24 }
  0x81   :  { %546 = vmatprep.subr.bf16.mxu0 %v713_v0 }
  0x84   :  { %547 = vmatpush3.bf16.msra.mxu0 %v587_v33 }
  0x85   :  { %548 = vmatprep.subr.bf16.mxu0 %v713_v0 }
  0x88   :  { %549 = vmatpush3.bf16.msra.mxu0 %v588_v34 }
 0x13e   :  { %v188_v26 = vpop.f32.mrb[0].mxu0 }
 0x13f   :  { %v189_v27 = vadd.f32 %v440_v25, %v188_v26  ;;  %v512_v28 = vpop.f32.mrb[1].mxu0 }
 0x140   :  { %v191_v29 = vpop.f32.mrb[2].mxu0 }
 0x141   :  { %v194_v30 = vmax.f32 %v189_v27, 0.0  ;;  %v513_v31 = vpop.f32.mrb[3].mxu0 }
 0x143   :  { %v195_v32 = vpack.c.bf16 %v194_v30, %v194_v30 }
 0x145   :  { %531 = vmatmul.mubr.bf16.vlgmr.msra.gmra.mrb[0].mxu1 %v195_v32 }
 0x218   :  { %v301_v36 = vpop.f32.mrb[0].mxu1 }
 0x219   :  { %v302_v37 = vadd.f32 %v449_v35, %v301_v36  ;;  %v532_v38 = vpop.f32.mrb[1].mxu1 }
 0x21a   :  { %v304_v39 = vpop.f32.mrb[2].mxu1 }
 0x21b   :  { %v307_v40 = vmax.f32 %v302_v37, 0.0  ;;  %v533_v41 = vpop.f32.mrb[3].mxu1 }
 0x21d   :  { %v308_v42 = vpack.c.bf16 %v307_v40, %v307_v40 }
 0x21f   :  { %551 = vmatmul.mubr.bf16.vlgmr.msra.gmra.mrb[4].mxu0 %v308_v42 }
 0x2f2   :  { %v414_v44 = vpop.f32.mrb[4].mxu0 }
 0x2f3   :  { %v415_v45 = vadd.f32 %v458_v43, %v414_v44  ;;  %v552_v46 = vpop.f32.mrb[5].mxu0 }
 0x2f4   :  { %v417_v47 = vpop.f32.mrb[6].mxu0 }
 0x2f5   :  { %v420_v48 = vmax.f32 %v415_v45, 0.0  ;;  %v553_v49 = vpop.f32.mrb[7].mxu0 }
 0x2f7   :  { %v554_v50 = vtrunc.f32 %v420_v48 }
 0x2f9   :  { %v555_v51 = vcvt.f32.s32 %v554_v50 }
 0x2fb   :  { %422 = vst [vmem:[#allocation10] sm:$0xff] %v555_v51 }
 0x2fc   :  { %688 = shalt.err (!%p685_p8)
}
 0x2fd   :  { %s689_s8 = scalar_lea.hbm %s871_s7, 128 }
 0x2fe   :  { %p690_p9 = scmp.ne.s32.totalorder %s871_s7, %s689_s8  ;;  %p693_p10 = scmp.lt.u32.totalorder %s689_s8, %s871_s7 }
 0x300   :  { %p695_p11 = pnand %p693_p10, %p690_p9 }
 0x302   :  { %698 = shalt.err (!%p695_p11)
}
 0x303   :  { %432 = dma.vmem_to_hbm [thread:$0]  %s430_s4, 128, %s871_s7, [#allocation4]  }
 0x304   :  { %705 = dma.done.wait [#allocation4], 128  }
 0x305   :  { %706 = vsyncadd [#allocation4], 4294967168 }
 0x306   :  { %436 = vsyncpa [#allocation3], 1 }
 0x307   :  { %437 = vsyncpa [#allocation6], 1 }
 0x308   :  { %438 = vsyncpa [#allocation9], 1 }
 0x309   :  { %439 = vsyncpa [#allocation4], 1 }

</bundles_post_ra>
